<compile_context>
chip_gen: v6e
topology: v6e:2x2x1
jax: 0.10.0
libtpu: 0.0.40
codegen_flags: <defaults>
</compile_context>

<pallas_src>
import functools

import jax
import jax.numpy as jnp
from jax.experimental import pallas as pl
from jax.experimental.pallas import tpu as pltpu


def _round_up(x, m):
    return ((x + m - 1) // m) * m


def _vmem_capacity_bytes():
    try:
        return int(pltpu.get_tpu_info().vmem_capacity_bytes)
    except Exception:
        return 64 << 20          # conservative fallback: v7x per-TC capacity


def _membank_kernel(h_ref, mem_ref, w1_ref, b1_ref, w2_ref, b2_ref, o_ref):
    h = h_ref[...]
    h_f32 = h.astype(jnp.float32)
    mem = mem_ref[...].astype(jnp.float32)

    # Linear1 + SiLU   (bf16 MXU operands, f32 accumulation)
    z1 = jnp.dot(h.astype(jnp.bfloat16), w1_ref[...],
                 preferred_element_type=jnp.float32) + b1_ref[...]
    a1 = z1 * jax.nn.sigmoid(z1)                       # SiLU(x) = x * sigmoid(x)

    # Linear2 + Sigmoid -> gate
    z2 = jnp.dot(a1.astype(jnp.bfloat16), w2_ref[...],
                 preferred_element_type=jnp.float32) + b2_ref[...]
    gate = jax.nn.sigmoid(z2)

    # h*gate + mem*(1-gate)  ==  mem + gate*(h - mem)
    o_ref[...] = (mem + gate * (h_f32 - mem)).astype(o_ref.dtype)


@functools.partial(jax.jit, static_argnames=("tile_m",), donate_argnums=(1,))
def membank_update(h, memory, w1, b1, w2, b2, *, tile_m=512):
    """get_h = h*gate + memory*(1-gate) with gate = mask_net(h).

    h, memory: [M, D]; w1, w2: [D, D] (bf16, pre-transposed); b1, b2: [1, D].
    The `memory` buffer is donated and aliased to the output (new memory).
    """
    M, D = h.shape
    gran = 16   # bf16 MXU operand packs 16 rows/vreg; also satisfies f32 (8,128)

    # Keep >= 4 grid steps when M allows (>= 2 per TensorCore on v7x) so input
    # DMA / output writeback overlap with compute on every core.
    quarter_m = _round_up(max(pl.cdiv(M, 4), gran), gran)
    tm = max(gran, min(_round_up(tile_m, gran), quarter_m))

    # Generation-aware scoped-VMEM ceiling + precise (non-inflated) budget:
    #   single-buffered weight/bias residents
    # + double-buffered h/mem/out row tiles
    # + ~5 f32 tm x D temporaries the body actually lives with.
    cap = _vmem_capacity_bytes()
    ceiling = max(32 << 20, int(cap * 0.85))
    itemsize = h.dtype.itemsize
    bytes_resident = (w1.size * w1.dtype.itemsize + w2.size * w2.dtype.itemsize
                      + b1.size * b1.dtype.itemsize + b2.size * b2.dtype.itemsize)

    def budget(tm_):
        return bytes_resident + 2 * 3 * tm_ * D * itemsize + 5 * tm_ * D * 4

    while tm > gran and budget(tm) > ceiling:
        tm = max(gran, _round_up(tm // 2, gran))
    vmem_limit = int(min(ceiling, max(budget(tm) + (2 << 20), 32 << 20)))

    grid = (pl.cdiv(M, tm),)          # ragged last block handled by Pallas
    row_spec = pl.BlockSpec((tm, D), lambda i: (i, 0))
    # Full-array, single-buffered VMEM residents (constant across the grid).
    resident = pl.BlockSpec(memory_space=pltpu.MemorySpace.VMEM)

    return pl.pallas_call(
        _membank_kernel,
        out_shape=jax.ShapeDtypeStruct((M, D), h.dtype),
        grid=grid,
        in_specs=[row_spec, row_spec, resident, resident, resident, resident],
        out_specs=row_spec,
        input_output_aliases={1: 0},   # donated memory buffer -> new memory/output
        compiler_params=pltpu.CompilerParams(
            dimension_semantics=("parallel",),
            vmem_limit_bytes=vmem_limit),
    )(h, memory, w1, b1, w2, b2)


class MemBankPallas:
    """JAX/Pallas port of MemBank. Memory state is kept on the Python object."""

    def __init__(self, dim, key):
        k1, k2, k3, k4 = jax.random.split(key, 4)
        bound = float(dim) ** -0.5
        # Stored pre-transposed (y = x @ W + b) and in bf16: halves weight DMA /
        # VMEM bytes and feeds the MXU's bf16 path (accumulation stays f32).
        self.w1 = jax.random.uniform(k1, (dim, dim), jnp.float32,
                                     -bound, bound).astype(jnp.bfloat16)
        self.b1 = jax.random.uniform(k2, (1, dim), jnp.float32, -bound, bound)
        self.w2 = jax.random.uniform(k3, (dim, dim), jnp.float32,
                                     -bound, bound).astype(jnp.bfloat16)
        self.b2 = jax.random.uniform(k4, (1, dim), jnp.float32, -bound, bound)
        self.memory = None

    def __call__(self, h, i, layer=None):
        if i == 0:
            # Copy: the memory buffer is donated on the next call; keep the
            # caller's h array valid.
            self.memory = jnp.copy(h)
            return h
        get_h = membank_update(h, self.memory, self.w1, self.b1, self.w2, self.b2)
        self.memory = get_h
        return get_h


def _reference(h, memory, w1_bf16, b1, w2_bf16, b2):
    # Mirrors the kernel's numerics (bf16 matmul operands, f32 accumulation).
    z1 = jnp.dot(h.astype(jnp.bfloat16), w1_bf16,
                 preferred_element_type=jnp.float32) + b1
    a1 = z1 * jax.nn.sigmoid(z1)
    z2 = jnp.dot(a1.astype(jnp.bfloat16), w2_bf16,
                 preferred_element_type=jnp.float32) + b2
    gate = jax.nn.sigmoid(z2)
    return h * gate + memory * (1.0 - gate)


if __name__ == "__main__":
    key = jax.random.PRNGKey(0)
    k_param, k_h0, k_h1 = jax.random.split(key, 3)

    batch, seq, dim = 2, 8, 128          # M = batch*seq = 16 tokens, D = 128
    bank = MemBankPallas(dim, k_param)

    h0 = jax.random.normal(k_h0, (batch * seq, dim), jnp.float32)
    h1 = jax.random.normal(k_h1, (batch * seq, dim), jnp.float32)

    # Reference for step i==1 (memory after step 0 is h0). Computed before the
    # kernel call; h0 itself stays valid because the i==0 path copies it.
    ref1 = _reference(h1, h0, bank.w1, bank.b1, bank.w2, bank.b2)
    ref1 = jax.block_until_ready(ref1)

    out0 = bank(h0, i=0, layer=0)        # i == 0: memory init (identity path)
    out1 = bank(h1, i=1, layer=0)        # i == 1: gated blend in the Pallas kernel
    out1 = jax.block_until_ready(out1)

    assert out0.shape == (batch * seq, dim) and out1.shape == (batch * seq, dim)
    assert jnp.allclose(out1, ref1, atol=1e-3, rtol=1e-3), "mismatch vs reference"

    print("KERNEL_OK")
</pallas_src>

<mosaic_0001>
module attributes {stable_mosaic.version = 11 : i64} {
  func.func @_membank_kernel(%arg0: i32, %arg1: memref<16x128xf32, #tpu.memory_space<vmem>>, %arg2: memref<16x128xf32, #tpu.memory_space<vmem>>, %arg3: memref<128x128xbf16, #tpu.memory_space<vmem>>, %arg4: memref<1x128xf32, #tpu.memory_space<vmem>>, %arg5: memref<128x128xbf16, #tpu.memory_space<vmem>>, %arg6: memref<1x128xf32, #tpu.memory_space<vmem>>, %arg7: memref<16x128xf32, #tpu.memory_space<vmem>>) attributes {dimension_semantics = [#tpu.dimension_semantics<parallel>], iteration_bounds = array<i64: 1>, scalar_prefetch = 0 : i64, scratch_operands = 0 : i64, tpu.core_type = #tpu.core_type<tc>, window_params = [{transform_indices = @transform_0, window_bounds = array<i64: 16, 128>}, {transform_indices = @transform_1, window_bounds = array<i64: 16, 128>}, {pipeline_mode = #tpu.pipeline_mode<synchronous>, transform_indices = @transform_2, window_bounds = array<i64: 128, 128>}, {pipeline_mode = #tpu.pipeline_mode<synchronous>, transform_indices = @transform_3, window_bounds = array<i64: 1, 128>}, {pipeline_mode = #tpu.pipeline_mode<synchronous>, transform_indices = @transform_4, window_bounds = array<i64: 128, 128>}, {pipeline_mode = #tpu.pipeline_mode<synchronous>, transform_indices = @transform_5, window_bounds = array<i64: 1, 128>}, {transform_indices = @transform_6, window_bounds = array<i64: 16, 128>}]} {
    %c0 = arith.constant 0 : index
    %c0_0 = arith.constant 0 : index
    %0 = vector.load %arg1[%c0, %c0_0] : memref<16x128xf32, #tpu.memory_space<vmem>>, vector<16x128xf32>
    %c0_1 = arith.constant 0 : index
    %c0_2 = arith.constant 0 : index
    %1 = vector.load %arg2[%c0_1, %c0_2] : memref<16x128xf32, #tpu.memory_space<vmem>>, vector<16x128xf32>
    %2 = arith.truncf %0 : vector<16x128xf32> to vector<16x128xbf16>
    %c0_3 = arith.constant 0 : index
    %c0_4 = arith.constant 0 : index
    %3 = vector.load %arg3[%c0_3, %c0_4] : memref<128x128xbf16, #tpu.memory_space<vmem>>, vector<128x128xbf16>
    %cst = arith.constant dense<0.000000e+00> : vector<16x128xf32>
    %4 = tpu.matmul %2, %3, %cst {dimension_numbers = #tpu.dot_dimension_numbers<[1], [0], [0], [1], [0, 0, 1, 1], [], []>} : vector<16x128xbf16>, vector<128x128xbf16>, vector<16x128xf32> -> vector<16x128xf32>
    %c0_5 = arith.constant 0 : index
    %c0_6 = arith.constant 0 : index
    %5 = vector.load %arg4[%c0_5, %c0_6] : memref<1x128xf32, #tpu.memory_space<vmem>>, vector<1x128xf32>
    %6 = vector.broadcast %5 : vector<1x128xf32> to vector<16x128xf32>
    %7 = arith.addf %4, %6 : vector<16x128xf32>
    %8 = arith.negf %7 : vector<16x128xf32>
    %9 = math.exp %8 : vector<16x128xf32>
    %cst_7 = arith.constant 1.000000e+00 : f32
    %10 = vector.broadcast %cst_7 : f32 to vector<16x128xf32>
    %11 = arith.addf %10, %9 : vector<16x128xf32>
    %12 = arith.divf %10, %11 : vector<16x128xf32>
    %13 = arith.mulf %7, %12 : vector<16x128xf32>
    %14 = arith.truncf %13 : vector<16x128xf32> to vector<16x128xbf16>
    %c0_8 = arith.constant 0 : index
    %c0_9 = arith.constant 0 : index
    %15 = vector.load %arg5[%c0_8, %c0_9] : memref<128x128xbf16, #tpu.memory_space<vmem>>, vector<128x128xbf16>
    %cst_10 = arith.constant dense<0.000000e+00> : vector<16x128xf32>
    %16 = tpu.matmul %14, %15, %cst_10 {dimension_numbers = #tpu.dot_dimension_numbers<[1], [0], [0], [1], [0, 0, 1, 1], [], []>} : vector<16x128xbf16>, vector<128x128xbf16>, vector<16x128xf32> -> vector<16x128xf32>
    %c0_11 = arith.constant 0 : index
    %c0_12 = arith.constant 0 : index
    %17 = vector.load %arg6[%c0_11, %c0_12] : memref<1x128xf32, #tpu.memory_space<vmem>>, vector<1x128xf32>
    %18 = vector.broadcast %17 : vector<1x128xf32> to vector<16x128xf32>
    %19 = arith.addf %16, %18 : vector<16x128xf32>
    %20 = arith.negf %19 : vector<16x128xf32>
    %21 = math.exp %20 : vector<16x128xf32>
    %cst_13 = arith.constant 1.000000e+00 : f32
    %22 = vector.broadcast %cst_13 : f32 to vector<16x128xf32>
    %23 = arith.addf %22, %21 : vector<16x128xf32>
    %24 = arith.divf %22, %23 : vector<16x128xf32>
    %25 = arith.subf %0, %1 : vector<16x128xf32>
    %26 = arith.mulf %24, %25 : vector<16x128xf32>
    %27 = arith.addf %1, %26 : vector<16x128xf32>
    %c0_14 = arith.constant 0 : index
    %c0_15 = arith.constant 0 : index
    %28 = vector.load %arg7[%c0_14, %c0_15] : memref<16x128xf32, #tpu.memory_space<vmem>>, vector<16x128xf32>
    tpu.vector_store %arg7[%c0_14, %c0_15], %27 {strides = array<i32>} : memref<16x128xf32, #tpu.memory_space<vmem>>, vector<16x128xf32>,
    return
  }
  func.func @transform_0(%arg0: i32) -> (i32, i32) {
    %c0_i32 = arith.constant 0 : i32
    %c0_i32_0 = arith.constant 0 : i32
    return %arg0, %c0_i32 : i32, i32
  }
  func.func @transform_1(%arg0: i32) -> (i32, i32) {
    %c0_i32 = arith.constant 0 : i32
    %c0_i32_0 = arith.constant 0 : i32
    return %arg0, %c0_i32 : i32, i32
  }
  func.func @transform_2(%arg0: i32) -> (i32, i32) {
    %c0_i32 = arith.constant 0 : i32
    %c0_i32_0 = arith.constant 0 : i32
    %c0_i32_1 = arith.constant 0 : i32
    return %c0_i32, %c0_i32_0 : i32, i32
  }
  func.func @transform_3(%arg0: i32) -> (i32, i32) {
    %c0_i32 = arith.constant 0 : i32
    %c0_i32_0 = arith.constant 0 : i32
    %c0_i32_1 = arith.constant 0 : i32
    return %c0_i32, %c0_i32_0 : i32, i32
  }
  func.func @transform_4(%arg0: i32) -> (i32, i32) {
    %c0_i32 = arith.constant 0 : i32
    %c0_i32_0 = arith.constant 0 : i32
    %c0_i32_1 = arith.constant 0 : i32
    return %c0_i32, %c0_i32_0 : i32, i32
  }
  func.func @transform_5(%arg0: i32) -> (i32, i32) {
    %c0_i32 = arith.constant 0 : i32
    %c0_i32_0 = arith.constant 0 : i32
    %c0_i32_1 = arith.constant 0 : i32
    return %c0_i32, %c0_i32_0 : i32, i32
  }
  func.func @transform_6(%arg0: i32) -> (i32, i32) {
    %c0_i32 = arith.constant 0 : i32
    %c0_i32_0 = arith.constant 0 : i32
    return %arg0, %c0_i32 : i32, i32
  }
}

</mosaic_0001>

<bundles_post_ra>
// kernel: membank_update.1
= control target key start
LH: loop header
LB: loop body
LE: loop exit
PB: predicated region body
PF: predicated region fallthrough
CT: control target
= control target key end

     0   :  { %11 = vsyncpa [#allocation3], 0  ;;  %s678_s0 = inlined_call_operand.hbm [shape: f32[16,128], index: 0, kind: input, shape index: {}]   ;;  %s679_s1 = inlined_call_operand.hbm [shape: f32[16,128], index: 1, kind: input, shape index: {}, may-alias: {1,6}]   ;;  %s680_s2 = inlined_call_operand.hbm [shape: bf16[128,128], index: 2, kind: input, shape index: {}]   ;;  %s681_s3 = inlined_call_operand.vmem [shape: f32[1,128], index: 3, kind: input, shape index: {}]   ;;  %s682_s4 = inlined_call_operand.hbm [shape: bf16[128,128], index: 4, kind: input, shape index: {}]   ;;  %s683_s5 = inlined_call_operand.vmem [shape: f32[1,128], index: 5, kind: input, shape index: {}]   ;;  %s684_s6 = inlined_call_operand.hbm [shape: f32[16,128], index: 6, kind: output, shape index: {}, may-alias: {1,6}]  }
   0x1   :  { %12 = vsyncpa [#allocation6], 0 }
   0x2   :  { %13 = vsyncpa [#allocation9], 0 }
   0x3   :  { %14 = vsyncpa [#allocation4], 0  ;;  %s594_s21 = smov [#allocation5]   ;;  %s595_s23 = smov [#allocation2]  }
   0x4   :  { %s32_s22 = sshll.u32 %s594_s21, 4  ;;  %s20_s24 = sshll.u32 %s595_s23, 4  ;;  %s33_s22 = int_to_ptr.vmem [resolvable:$true] %s32_s22  ;;  %s21_s24 = int_to_ptr.vmem [resolvable:$true] %s20_s24 }
   0x5   :  { %s494_s25 = scalar_lea.vmem %s33_s22, 256  ;;  %p499_p1 = scmp.lt.s32.totalorder %s33_s22, %s33_s22 }
   0x6   :  { %p495_p0 = scmp.ne.s32.totalorder %s33_s22, %s494_s25  ;;  %p500_p2 = scmp.lt.s32.totalorder %s494_s25, %s494_s25 }
   0x8   :  { %p501_p3 = por %p500_p2, %p499_p1 }
   0xa   :  { %p502_p4 = pnand %p501_p3, %p495_p0 }
   0xc   :  { %505 = shalt.err (!%p502_p4)
}
   0xd   :  { %s596_s26 = smov 128   ;;  %s597_s27 = smov 8  }
   0xe   :  { %38 = dma.hbm_to_vmem [thread:$0]  %s679_s1, 256, %s33_s22, [#allocation6], %s596_s26, %s596_s26, %s597_s27  }
   0xf   :  { %s514_s30 = scalar_lea.vmem %s21_s24, 256  ;;  %p519_p6 = scmp.lt.s32.totalorder %s21_s24, %s21_s24 }
  0x10   :  { %p515_p5 = scmp.ne.s32.totalorder %s21_s24, %s514_s30  ;;  %p520_p7 = scmp.lt.s32.totalorder %s514_s30, %s514_s30 }
  0x12   :  { %p521_p8 = por %p520_p7, %p519_p6 }
  0x14   :  { %p522_p9 = pnand %p521_p8, %p515_p5 }
  0x16   :  { %525 = shalt.err (!%p522_p9)
}
  0x17   :  { %26 = dma.hbm_to_vmem [thread:$0]  %s678_s0, 256, %s21_s24, [#allocation3], %s596_s26, %s596_s26, %s597_s27  }
  0x18   :  { %s598_s9 = smov [#allocation7]  }
  0x19   :  { %s44_s10 = sshll.u32 %s598_s9, 4  ;;  %s45_s10 = int_to_ptr.vmem [resolvable:$true] %s44_s10 }
  0x1a   :  { %s534_s11 = scalar_lea.vmem %s45_s10, 1024  ;;  %p539_p11 = scmp.lt.s32.totalorder %s45_s10, %s45_s10 }
  0x1b   :  { %p535_p10 = scmp.ne.s32.totalorder %s45_s10, %s534_s11  ;;  %p540_p12 = scmp.lt.s32.totalorder %s534_s11, %s534_s11 }
  0x1d   :  { %p541_p13 = por %p540_p12, %p539_p11 }
  0x1f   :  { %p542_p0 = pnand %p541_p13, %p535_p10 }
  0x21   :  { %545 = shalt.err (!%p542_p0)
}
  0x22   :  { %s599_s1 = smov 64   ;;  %s600_s12 = smov 4  }
  0x23   :  { %50 = dma.hbm_to_vmem [thread:$0]  %s680_s2, 1024, %s45_s10, [#allocation6], %s599_s1, %s599_s1, %s600_s12  }
  0x24   :  { %s601_s15 = smov [#allocation8]  }
  0x25   :  { %s58_s16 = sshll.u32 %s601_s15, 4  ;;  %s59_s16 = int_to_ptr.vmem [resolvable:$true] %s58_s16 }
  0x26   :  { %s554_s0 = scalar_lea.vmem %s59_s16, 1024  ;;  %p559_p2 = scmp.lt.s32.totalorder %s59_s16, %s59_s16 }
  0x27   :  { %p555_p1 = scmp.ne.s32.totalorder %s59_s16, %s554_s0  ;;  %p560_p3 = scmp.lt.s32.totalorder %s554_s0, %s554_s0 }
  0x29   :  { %p561_p4 = por %p560_p3, %p559_p2 }
  0x2b   :  { %p562_p5 = pnand %p561_p4, %p555_p1 }
  0x2d   :  { %565 = shalt.err (!%p562_p5)
}
  0x2e   :  { %64 = dma.hbm_to_vmem [thread:$0]  %s682_s4, 1024, %s59_s16, [#allocation9], %s599_s1, %s599_s1, %s600_s12  }
  0x2f   :  { %586 = dma.done.wait [#allocation3], 256  }
  0x30   :  { %587 = vsyncadd [#allocation3], 4294967040 }
  0x31   :  { %588 = dma.done.wait [#allocation6], 1280  }
  0x32   :  { %589 = vsyncadd [#allocation6], 4294966016 }
  0x33   :  { %590 = dma.done.wait [#allocation9], 1024  }
  0x34   :  { %591 = vsyncadd [#allocation9], 4294966272  ;;  %v602_v0 = vmov 0.0   ;;  %vm603_vm0 = vmmov 0   ;;  %v454_v1 = vld [vmem:[#allocation7 + $0x38] sm:$0xff]   ;;  %v455_v2 = vld [vmem:[#allocation7 + $0x30] sm:$0xff]  }
  0x35   :  { %403 = vmatprep.subr.bf16.mxu0 %v602_v0  ;;  %419 = vmatprep.mubr.msk.bf16.mxu0 %vm603_vm0, %v602_v0  ;;  %v456_v3 = vld [vmem:[#allocation7 + $0x28] sm:$0xff]   ;;  %v457_v4 = vld [vmem:[#allocation7 + $0x20] sm:$0xff]   ;;  %v458_v5 = vld [vmem:[#allocation7 + $0x18] sm:$0xff]  }
  0x36   :  { %423 = vmatprep.subr.bf16.mxu1 %v602_v0  ;;  %439 = vmatprep.mubr.msk.bf16.mxu1 %vm603_vm0, %v602_v0  ;;  %v459_v6 = vld [vmem:[#allocation7 + $0x10] sm:$0xff]   ;;  %v460_v7 = vld [vmem:[#allocation7 + $0x8] sm:$0xff]   ;;  %v461_v8 = vld [vmem:[#allocation7] sm:$0xff]  }
  0x37   :  { %404 = vmatpush3.bf16.msra.mxu0 %v454_v1  ;;  %v658_v9 = vld [vmem:[#allocation2] sm:$0xff]  ;;  %v660_v10 = vld [vmem:[#allocation2 + $0x8] sm:$0xff]  ;;  %v462_v12 = vld [vmem:[#allocation8 + $0x38] sm:$0xff]  }
  0x38   :  { %405 = vmatprep.subr.bf16.mxu0 %v602_v0  ;;  %v84_v11 = vpack.c.bf16 %v660_v10, %v658_v9  ;;  %424 = vmatpush3.bf16.msra.mxu1 %v462_v12  ;;  %v463_v13 = vld [vmem:[#allocation8 + $0x30] sm:$0xff]   ;;  %v464_v14 = vld [vmem:[#allocation8 + $0x28] sm:$0xff]   ;;  %v465_v15 = vld [vmem:[#allocation8 + $0x20] sm:$0xff]  }
  0x39   :  { %425 = vmatprep.subr.bf16.mxu1 %v602_v0  ;;  %v466_v16 = vld [vmem:[#allocation8 + $0x18] sm:$0xff]   ;;  %v467_v17 = vld [vmem:[#allocation8 + $0x10] sm:$0xff]   ;;  %v468_v18 = vld [vmem:[#allocation8 + $0x8] sm:$0xff]  }
  0x3a   :  { %v469_v19 = vld [vmem:[#allocation8] sm:$0xff]   ;;  %v82_v51 = vld [vmem:[#allocation5] sm:$0xff]  ;;  %v83_v53 = vld [vmem:[#allocation5 + $0x8] sm:$0xff] }
  0x3b   :  { %406 = vmatpush3.bf16.msra.mxu0 %v455_v2  ;;  %v363_v20 = vld [vmem:[%s681_s3] ss:$0 sm:$0xff]  ;;  %v336_v52 = vsub.f32 %v658_v9, %v82_v51  ;;  %v337_v55 = vsub.f32 %v660_v10, %v83_v53 }
  0x3c   :  { %407 = vmatprep.subr.bf16.mxu0 %v602_v0  ;;  %426 = vmatpush3.bf16.msra.mxu1 %v463_v13  ;;  %v374_v38 = vld [vmem:[%s683_s5] ss:$0 sm:$0xff]  ;;  %s604_s5 = smov [#allocation10]  }
  0x3d   :  { %427 = vmatprep.subr.bf16.mxu1 %v602_v0  ;;  %s349_s20 = sshll.u32 %s604_s5, 4  ;;  %s350_s20 = int_to_ptr.vmem [resolvable:$true] %s349_s20 }
  0x3e   :  { %s566_s21 = scalar_lea.vmem %s350_s20, 256  ;;  %p571_p7 = scmp.lt.s32.totalorder %s350_s20, %s350_s20 }
  0x3f   :  { %408 = vmatpush3.bf16.msra.mxu0 %v456_v3  ;;  %p567_p6 = scmp.ne.s32.totalorder %s350_s20, %s566_s21  ;;  %p572_p8 = scmp.lt.s32.totalorder %s566_s21, %s566_s21 }
  0x40   :  { %409 = vmatprep.subr.bf16.mxu0 %v602_v0  ;;  %428 = vmatpush3.bf16.msra.mxu1 %v464_v14 }
  0x41   :  { %429 = vmatprep.subr.bf16.mxu1 %v602_v0  ;;  %p573_p9 = por %p572_p8, %p571_p7 }
  0x43   :  { %410 = vmatpush3.bf16.msra.mxu0 %v457_v4  ;;  %p574_p10 = pnand %p573_p9, %p567_p6 }
  0x44   :  { %411 = vmatprep.subr.bf16.mxu0 %v602_v0  ;;  %430 = vmatpush3.bf16.msra.mxu1 %v465_v15 }
  0x45   :  { %431 = vmatprep.subr.bf16.mxu1 %v602_v0 }
  0x47   :  { %412 = vmatpush3.bf16.msra.mxu0 %v458_v5 }
  0x48   :  { %413 = vmatprep.subr.bf16.mxu0 %v602_v0  ;;  %432 = vmatpush3.bf16.msra.mxu1 %v466_v16 }
  0x49   :  { %433 = vmatprep.subr.bf16.mxu1 %v602_v0 }
  0x4b   :  { %414 = vmatpush3.bf16.msra.mxu0 %v459_v6 }
  0x4c   :  { %415 = vmatprep.subr.bf16.mxu0 %v602_v0  ;;  %434 = vmatpush3.bf16.msra.mxu1 %v467_v17 }
  0x4d   :  { %435 = vmatprep.subr.bf16.mxu1 %v602_v0 }
  0x4f   :  { %416 = vmatpush3.bf16.msra.mxu0 %v460_v7 }
  0x50   :  { %417 = vmatprep.subr.bf16.mxu0 %v602_v0  ;;  %436 = vmatpush3.bf16.msra.mxu1 %v468_v18 }
  0x51   :  { %437 = vmatprep.subr.bf16.mxu1 %v602_v0 }
  0x53   :  { %418 = vmatpush3.bf16.msra.mxu0 %v461_v8 }
  0x54   :  { %438 = vmatpush3.bf16.msra.mxu1 %v469_v19 }
  0x56   :  { %420 = vmatmul.mubr.bf16.vlgmr.msra.gmra.mxu0 %v84_v11 }
 0x116   :  { %v190_v21 = vpop.f32.mrf.mxu0 }
 0x117   :  { %v191_v22 = vadd.f32 %v363_v20, %v190_v21 }
 0x118   :  { %v421_v23 = vpop.f32.mrf.mxu0 }
 0x119   :  { %v372_v24 = vmul.f32 -1.442695, %v191_v22 }
 0x11a   :  { %v193_v25 = vpop.f32.mrf.mxu0 }
 0x11b   :  { %470 = vpow2.f32 %v372_v24  ;;  %v194_v26 = vadd.f32 %v363_v20, %v193_v25 }
 0x11c   :  { %v422_v27 = vpop.f32.mrf.mxu0 }
 0x11d   :  { %v373_v28 = vmul.f32 -1.442695, %v194_v26 }
 0x11f   :  { %472 = vpow2.f32 %v373_v28 }
 0x128   :  { %v471_v29 = vpop.eup %470 }
 0x129   :  { %v203_v30 = vadd.f32 1.0, %v471_v29 }
 0x12b   :  { %474 = vrcp.f32 %v203_v30 }
 0x12c   :  { %v473_v31 = vpop.eup %472 }
 0x12d   :  { %v204_v32 = vadd.f32 1.0, %v473_v31 }
 0x12f   :  { %476 = vrcp.f32 %v204_v32 }
 0x138   :  { %v475_v33 = vpop.eup %474 }
 0x139   :  { %v209_v35 = vmul.f32 %v475_v33, %v191_v22 }
 0x13c   :  { %v477_v34 = vpop.eup %476 }
 0x13d   :  { %v210_v36 = vmul.f32 %v477_v34, %v194_v26 }
 0x13f   :  { %v211_v37 = vpack.c.bf16 %v210_v36, %v209_v35 }
 0x141   :  { %440 = vmatmul.mubr.bf16.vlgmr.msra.gmra.mxu1 %v211_v37 }
 0x201   :  { %v317_v39 = vpop.f32.mrf.mxu1 }
 0x202   :  { %v318_v40 = vadd.f32 %v374_v38, %v317_v39 }
 0x203   :  { %v441_v41 = vpop.f32.mrf.mxu1 }
 0x204   :  { %v383_v42 = vmul.f32 -1.442695, %v318_v40 }
 0x205   :  { %v320_v43 = vpop.f32.mrf.mxu1 }
 0x206   :  { %478 = vpow2.f32 %v383_v42  ;;  %v321_v44 = vadd.f32 %v374_v38, %v320_v43 }
 0x207   :  { %v442_v45 = vpop.f32.mrf.mxu1 }
 0x208   :  { %v384_v46 = vmul.f32 -1.442695, %v321_v44 }
 0x20a   :  { %480 = vpow2.f32 %v384_v46 }
 0x213   :  { %v479_v47 = vpop.eup %478 }
 0x214   :  { %v330_v48 = vadd.f32 1.0, %v479_v47 }
 0x216   :  { %482 = vrcp.f32 %v330_v48 }
 0x217   :  { %v481_v49 = vpop.eup %480 }
 0x218   :  { %v331_v50 = vadd.f32 1.0, %v481_v49 }
 0x21a   :  { %484 = vrcp.f32 %v331_v50 }
 0x223   :  { %v483_v54 = vpop.eup %482 }
 0x224   :  { %v338_v56 = vmul.f32 %v483_v54, %v336_v52 }
 0x226   :  { %v340_v57 = vadd.f32 %v338_v56, %v82_v51 }
 0x227   :  { %v485_v58 = vpop.eup %484 }
 0x228   :  { %v339_v59 = vmul.f32 %v485_v58, %v337_v55  ;;  %342 = vst [vmem:[#allocation10] sm:$0xff] %v340_v57 }
 0x22a   :  { %v341_v60 = vadd.f32 %v339_v59, %v83_v53 }
 0x22c   :  { %343 = vst [vmem:[#allocation10 + $0x8] sm:$0xff] %v341_v60 }
 0x22d   :  { %577 = shalt.err (!%p574_p10)
}
 0x22e   :  { %355 = dma.vmem_to_hbm [thread:$0]  %s350_s20, 256, %s684_s6, [#allocation4], %s596_s26, %s596_s26, %s597_s27  }
 0x22f   :  { %592 = dma.done.wait [#allocation4], 256  }
 0x230   :  { %593 = vsyncadd [#allocation4], 4294967040 }
 0x231   :  { %359 = vsyncpa [#allocation3], 1 }
 0x232   :  { %360 = vsyncpa [#allocation6], 1 }
 0x233   :  { %361 = vsyncpa [#allocation9], 1 }
 0x234   :  { %362 = vsyncpa [#allocation4], 1 }

</bundles_post_ra>
